<compile_context>
chip_gen: v5e
topology: v5e:2x2
jax: 0.10.0
libtpu: 0.0.40
codegen_flags: <defaults>
</compile_context>

<pallas_src>
import functools

import jax
import jax.numpy as jnp
from jax.experimental import pallas as pl
from jax.experimental.pallas import tpu as pltpu


def _dgconv_mixhop_kernel(x_ref, akron_ref, w_ref, b_ref, out_ref, ho_ref,
                          *, c_in, gdep, alpha):
    f32 = jnp.float32
    x = x_ref[0]                        # (C_in, N*T)   lane-dense slab
    A = akron_ref[...]                  # (N*T, N*T) == kron(a, I_T)

    # hop 0 is x itself; stage every hop into the (gdep+1)*C_in x N*T scratch.
    ho_ref[0:c_in, :] = x
    h = x
    for g in range(1, gdep + 1):
        # all channels propagated in a single MXU matmul per hop
        h = alpha * x + (1.0 - alpha) * jnp.dot(h, A, preferred_element_type=f32)
        ho_ref[g * c_in:(g + 1) * c_in, :] = h

    # 1x1 conv over the concatenated hop/channel axis as a single MXU matmul.
    y = jnp.dot(w_ref[...], ho_ref[...], preferred_element_type=f32) + b_ref[...]
    out_ref[0] = y.astype(out_ref.dtype)
    # NOTE: self.dropout is stored on the module but never applied in forward().


def dgconv_mixhop_forward(x, adj, mlp_w, mlp_b, *, gdep=3, alpha=0.05):
    """x: (B, C_in, N, T), adj: (N, N), mlp_w: (C_out, (gdep+1)*C_in), mlp_b: (C_out,)."""
    B, C, N, T = x.shape
    C_out = mlp_w.shape[0]
    NT = N * T

    # adjacency normalization, matching torch: adj + I, then row-normalize.
    a = adj.astype(jnp.float32) + jnp.eye(N, dtype=jnp.float32)
    a = a / jnp.sum(a, axis=1, keepdims=True)
    # Lift the node-mixing operator onto the flattened (node*time) lane axis so
    # one matmul propagates every channel: kron(a, I_T)[v*T+t, w*T+t] = a[v, w].
    akron = jnp.kron(a, jnp.eye(T, dtype=jnp.float32))            # (N*T, N*T)

    x_flat = x.reshape(B, C, NT).astype(jnp.float32)              # lane-dense input
    w2d = mlp_w.reshape(C_out, (gdep + 1) * C).astype(jnp.float32)
    b2d = mlp_b.reshape(C_out, 1).astype(jnp.float32)

    kernel = functools.partial(_dgconv_mixhop_kernel,
                               c_in=C, gdep=gdep, alpha=float(alpha))

    out_flat = pl.pallas_call(
        kernel,
        out_shape=jax.ShapeDtypeStruct((B, C_out, NT), jnp.float32),
        grid=(B,),
        in_specs=[
            pl.BlockSpec((1, C, NT), lambda b: (b, 0, 0)),        # x slab
            pl.BlockSpec((NT, NT), lambda b: (0, 0)),             # kron(a, I_T)
            pl.BlockSpec((C_out, (gdep + 1) * C), lambda b: (0, 0)),  # mlp weight
            pl.BlockSpec((C_out, 1), lambda b: (0, 0)),           # mlp bias
        ],
        out_specs=pl.BlockSpec((1, C_out, NT), lambda b: (b, 0, 0)),
        scratch_shapes=[pltpu.VMEM(((gdep + 1) * C, NT), jnp.float32)],
        compiler_params=pltpu.CompilerParams(
            dimension_semantics=("parallel",)),
    )(x_flat, akron, w2d, b2d)

    return out_flat.reshape(B, C_out, N, T)


def _reference(x, adj, mlp_w, mlp_b, gdep, alpha):
    """Pure-JAX mirror of the PyTorch dgconv_mixhop forward."""
    N = adj.shape[0]
    a = adj + jnp.eye(N, dtype=adj.dtype)
    a = a / jnp.sum(a, axis=1, keepdims=True)
    h = x
    outs = [h]
    for _ in range(gdep):
        h = alpha * x + (1.0 - alpha) * jnp.einsum('bcvl,vw->bcwl', h, a)
        outs.append(h)
    ho = jnp.concatenate(outs, axis=1)
    return jnp.einsum('oi,bint->bont', mlp_w, ho) + mlp_b[None, :, None, None]


if __name__ == "__main__":
    B, C_in, C_out, N, T = 2, 4, 4, 16, 16
    GDEP, ALPHA = 3, 0.05

    key = jax.random.PRNGKey(0)
    ks = jax.random.split(key, 4)
    x = jax.random.normal(ks[0], (B, C_in, N, T), jnp.float32)
    # non-negative adjacency (the +I term keeps every row sum >= 1)
    adj = jax.nn.relu(jax.random.normal(ks[1], (N, N), jnp.float32))
    mlp_w = jax.random.normal(ks[2], (C_out, (GDEP + 1) * C_in), jnp.float32) * 0.1
    mlp_b = jax.random.normal(ks[3], (C_out,), jnp.float32) * 0.1

    out = dgconv_mixhop_forward(x, adj, mlp_w, mlp_b, gdep=GDEP, alpha=ALPHA)
    out = jax.block_until_ready(out)

    ref = _reference(x, adj, mlp_w, mlp_b, GDEP, ALPHA)
    assert out.shape == (B, C_out, N, T)
    err = float(jnp.max(jnp.abs(out - ref)))
    assert jnp.allclose(out, ref, rtol=1e-4, atol=1e-4), f"max abs err {err}"
    print("KERNEL_OK")
</pallas_src>

<mosaic_0001>
module attributes {stable_mosaic.version = 11 : i64} {
  func.func @_dgconv_mixhop_kernel(%arg0: i32, %arg1: memref<1x4x256xf32, #tpu.memory_space<vmem>>, %arg2: memref<256x256xf32, #tpu.memory_space<vmem>>, %arg3: memref<4x16xf32, #tpu.memory_space<vmem>>, %arg4: memref<4x1xf32, #tpu.memory_space<vmem>>, %arg5: memref<1x4x256xf32, #tpu.memory_space<vmem>>, %arg6: memref<16x256xf32, #tpu.memory_space<vmem>>) attributes {dimension_semantics = [#tpu.dimension_semantics<parallel>], iteration_bounds = array<i64: 2>, scalar_prefetch = 0 : i64, scratch_operands = 1 : i64, tpu.core_type = #tpu.core_type<tc>, window_params = [{transform_indices = @transform_0, window_bounds = array<i64: 1, 4, 256>}, {pipeline_mode = #tpu.pipeline_mode<synchronous>, transform_indices = @transform_1, window_bounds = array<i64: 256, 256>}, {pipeline_mode = #tpu.pipeline_mode<synchronous>, transform_indices = @transform_2, window_bounds = array<i64: 4, 16>}, {pipeline_mode = #tpu.pipeline_mode<synchronous>, transform_indices = @transform_3, window_bounds = array<i64: 4, 1>}, {transform_indices = @transform_4, window_bounds = array<i64: 1, 4, 256>}]} {
    %c0 = arith.constant 0 : index
    %c0_0 = arith.constant 0 : index
    %c0_1 = arith.constant 0 : index
    %0 = vector.load %arg1[%c0, %c0_0, %c0_1] : memref<1x4x256xf32, #tpu.memory_space<vmem>>, vector<1x4x256xf32>
    %1 = vector.shape_cast %0 : vector<1x4x256xf32> to vector<4x256xf32>
    %c0_2 = arith.constant 0 : index
    %c0_3 = arith.constant 0 : index
    %2 = vector.load %arg2[%c0_2, %c0_3] : memref<256x256xf32, #tpu.memory_space<vmem>>, vector<256x256xf32>
    %c0_4 = arith.constant 0 : index
    %c0_5 = arith.constant 0 : index
    %3 = vector.load %arg6[%c0_4, %c0_5] : memref<16x256xf32, #tpu.memory_space<vmem>>, vector<4x256xf32>
    tpu.vector_store %arg6[%c0_4, %c0_5], %1 {strides = array<i32>} : memref<16x256xf32, #tpu.memory_space<vmem>>, vector<4x256xf32>,
    %cst = arith.constant 5.000000e-02 : f32
    %4 = vector.broadcast %cst : f32 to vector<4x256xf32>
    %5 = arith.mulf %4, %1 : vector<4x256xf32>
    %cst_6 = arith.constant dense<0.000000e+00> : vector<4x256xf32>
    %6 = tpu.matmul %1, %2, %cst_6 {dimension_numbers = #tpu.dot_dimension_numbers<[1], [0], [0], [1], [0, 0, 1, 1], [], []>} : vector<4x256xf32>, vector<256x256xf32>, vector<4x256xf32> -> vector<4x256xf32>
    %cst_7 = arith.constant 0.949999988 : f32
    %7 = vector.broadcast %cst_7 : f32 to vector<4x256xf32>
    %8 = arith.mulf %7, %6 : vector<4x256xf32>
    %9 = arith.addf %5, %8 : vector<4x256xf32>
    %c4 = arith.constant 4 : index
    %c0_8 = arith.constant 0 : index
    %10 = vector.load %arg6[%c4, %c0_8] : memref<16x256xf32, #tpu.memory_space<vmem>>, vector<4x256xf32>
    tpu.vector_store %arg6[%c4, %c0_8], %9 {strides = array<i32>} : memref<16x256xf32, #tpu.memory_space<vmem>>, vector<4x256xf32>,
    %cst_9 = arith.constant 5.000000e-02 : f32
    %11 = vector.broadcast %cst_9 : f32 to vector<4x256xf32>
    %12 = arith.mulf %11, %1 : vector<4x256xf32>
    %cst_10 = arith.constant dense<0.000000e+00> : vector<4x256xf32>
    %13 = tpu.matmul %9, %2, %cst_10 {dimension_numbers = #tpu.dot_dimension_numbers<[1], [0], [0], [1], [0, 0, 1, 1], [], []>} : vector<4x256xf32>, vector<256x256xf32>, vector<4x256xf32> -> vector<4x256xf32>
    %cst_11 = arith.constant 0.949999988 : f32
    %14 = vector.broadcast %cst_11 : f32 to vector<4x256xf32>
    %15 = arith.mulf %14, %13 : vector<4x256xf32>
    %16 = arith.addf %12, %15 : vector<4x256xf32>
    %c8 = arith.constant 8 : index
    %c0_12 = arith.constant 0 : index
    %17 = vector.load %arg6[%c8, %c0_12] : memref<16x256xf32, #tpu.memory_space<vmem>>, vector<4x256xf32>
    tpu.vector_store %arg6[%c8, %c0_12], %16 {strides = array<i32>} : memref<16x256xf32, #tpu.memory_space<vmem>>, vector<4x256xf32>,
    %cst_13 = arith.constant 5.000000e-02 : f32
    %18 = vector.broadcast %cst_13 : f32 to vector<4x256xf32>
    %19 = arith.mulf %18, %1 : vector<4x256xf32>
    %cst_14 = arith.constant dense<0.000000e+00> : vector<4x256xf32>
    %20 = tpu.matmul %16, %2, %cst_14 {dimension_numbers = #tpu.dot_dimension_numbers<[1], [0], [0], [1], [0, 0, 1, 1], [], []>} : vector<4x256xf32>, vector<256x256xf32>, vector<4x256xf32> -> vector<4x256xf32>
    %cst_15 = arith.constant 0.949999988 : f32
    %21 = vector.broadcast %cst_15 : f32 to vector<4x256xf32>
    %22 = arith.mulf %21, %20 : vector<4x256xf32>
    %23 = arith.addf %19, %22 : vector<4x256xf32>
    %c12 = arith.constant 12 : index
    %c0_16 = arith.constant 0 : index
    %24 = vector.load %arg6[%c12, %c0_16] : memref<16x256xf32, #tpu.memory_space<vmem>>, vector<4x256xf32>
    tpu.vector_store %arg6[%c12, %c0_16], %23 {strides = array<i32>} : memref<16x256xf32, #tpu.memory_space<vmem>>, vector<4x256xf32>,
    %c0_17 = arith.constant 0 : index
    %c0_18 = arith.constant 0 : index
    %25 = vector.load %arg3[%c0_17, %c0_18] : memref<4x16xf32, #tpu.memory_space<vmem>>, vector<4x16xf32>
    %c0_19 = arith.constant 0 : index
    %c0_20 = arith.constant 0 : index
    %26 = vector.load %arg6[%c0_19, %c0_20] : memref<16x256xf32, #tpu.memory_space<vmem>>, vector<16x256xf32>
    %cst_21 = arith.constant dense<0.000000e+00> : vector<4x256xf32>
    %27 = tpu.matmul %25, %26, %cst_21 {dimension_numbers = #tpu.dot_dimension_numbers<[1], [0], [0], [1], [0, 0, 1, 1], [], []>} : vector<4x16xf32>, vector<16x256xf32>, vector<4x256xf32> -> vector<4x256xf32>
    %c0_22 = arith.constant 0 : index
    %c0_23 = arith.constant 0 : index
    %28 = vector.load %arg4[%c0_22, %c0_23] : memref<4x1xf32, #tpu.memory_space<vmem>>, vector<4x1xf32>
    %29 = vector.broadcast %28 : vector<4x1xf32> to vector<4x256xf32>
    %30 = arith.addf %27, %29 : vector<4x256xf32>
    %c0_24 = arith.constant 0 : index
    %c0_25 = arith.constant 0 : index
    %c0_26 = arith.constant 0 : index
    %31 = vector.load %arg5[%c0_24, %c0_25, %c0_26] : memref<1x4x256xf32, #tpu.memory_space<vmem>>, vector<1x4x256xf32>
    %32 = vector.shape_cast %31 : vector<1x4x256xf32> to vector<4x256xf32>
    %33 = vector.shape_cast %30 : vector<4x256xf32> to vector<1x4x256xf32>
    tpu.vector_store %arg5[%c0_24, %c0_25, %c0_26], %33 {strides = array<i32>} : memref<1x4x256xf32, #tpu.memory_space<vmem>>, vector<1x4x256xf32>,
    return
  }
  func.func @transform_0(%arg0: i32) -> (i32, i32, i32) {
    %c0_i32 = arith.constant 0 : i32
    %c0_i32_0 = arith.constant 0 : i32
    %c0_i32_1 = arith.constant 0 : i32
    return %arg0, %c0_i32, %c0_i32_0 : i32, i32, i32
  }
  func.func @transform_1(%arg0: i32) -> (i32, i32) {
    %c0_i32 = arith.constant 0 : i32
    %c0_i32_0 = arith.constant 0 : i32
    %c0_i32_1 = arith.constant 0 : i32
    return %c0_i32, %c0_i32_0 : i32, i32
  }
  func.func @transform_2(%arg0: i32) -> (i32, i32) {
    %c0_i32 = arith.constant 0 : i32
    %c0_i32_0 = arith.constant 0 : i32
    %c0_i32_1 = arith.constant 0 : i32
    return %c0_i32, %c0_i32_0 : i32, i32
  }
  func.func @transform_3(%arg0: i32) -> (i32, i32) {
    %c0_i32 = arith.constant 0 : i32
    %c0_i32_0 = arith.constant 0 : i32
    %c0_i32_1 = arith.constant 0 : i32
    return %c0_i32, %c0_i32_0 : i32, i32
  }
  func.func @transform_4(%arg0: i32) -> (i32, i32, i32) {
    %c0_i32 = arith.constant 0 : i32
    %c0_i32_0 = arith.constant 0 : i32
    %c0_i32_1 = arith.constant 0 : i32
    return %arg0, %c0_i32, %c0_i32_0 : i32, i32, i32
  }
}

</mosaic_0001>

<bundles_post_ra>
// kernel: tpu_custom_call.1
= control target key start
LH: loop header
LB: loop body
LE: loop exit
PB: predicated region body
PF: predicated region fallthrough
CT: control target
= control target key end

     0   :  { %9 = vsyncpa [#allocation4], 0  ;;  %s1491_s0 = inlined_call_operand.hbm [shape: f32[2,4,256], index: 0, kind: input, shape index: {}]   ;;  %s1492_s1 = inlined_call_operand.hbm [shape: f32[256,256], index: 1, kind: input, shape index: {}]   ;;  %s1493_s2 = inlined_call_operand.vmem [shape: f32[4,16], index: 2, kind: input, shape index: {}]   ;;  %s1494_s3 = inlined_call_operand.vmem [shape: f32[4,1], index: 3, kind: input, shape index: {}]   ;;  %s1495_s4 = inlined_call_operand.hbm [shape: f32[2,4,256], index: 4, kind: output, shape index: {}]  }
   0x1   :  { %11 = vsyncpa [#allocation4 + $0x1], 0 }
   0x2   :  { %12 = vsyncpa [#allocation7], 0 }
   0x3   :  { %13 = vsyncpa [#allocation5], 0 }
   0x4   :  { %15 = vsyncpa [#allocation5 + $0x1], 0  ;;  %s1013_s15 = smov 0   ;;  %s1015_s16 = smov 0  }
   0x5   :  { %s1017_s17 = smov 0   ;;  %s1019_s18 = smov 0  }
   0x6 LB: > { %s152_s21 = sshll.u32 %s1492_s1, 4  ;;  %s1037_s22 = sadd.s32 4294967295, %s982_s18   ;;  %s982_s18 = sphi %s1019_s18, %s1516_s18   ;;  %s978_s17 = sphi %s1017_s17, %s1515_s17   ;;  %s974_s16 = sphi %s1015_s16, %s1514_s16   ;;  %s970_s15 = sphi %s1013_s15, %s1513_s15   ;;  %s153_s21 = int_to_ptr.hbm [resolvable:$true] %s152_s21 }
   0x7   : > { %p772_p0 = scmp.ge.s32.totalorder %s982_s18, 1  ;;  %p42_p1 = scmp.eq.s32.totalorder %s1037_s22, 0 }
   0x8   : > { %p141_p2 = scmp.lt.s32.totalorder %s982_s18, 3  ;;  %s984_s24 = smov [#allocation6]  }
   0x9   : > { %s154_s25 = sshll.u32 %s984_s24, 4  ;;  %s985_s26 = smov 256   ;;  %s155_s25 = int_to_ptr.vmem [resolvable:$true] %s154_s25 }
   0xa   : > { %p1042_p3 = pnand %p772_p0, %p141_p2  ;;  %s986_s27 = smov 16  }
   0xb   : > { %s771_s28 = sadd.s32 4294967294, %s982_s18   ;;  %s1053_s29 = sadd.s32 1, %s982_s18  }
   0xc   : > { %p799_p4 = pneg %p1042_p3  ;;  %s28_s30 = sadd.s32 1, %s978_s17 }
   0xd   : > { %s25_s5 = ssub.s32 %s982_s18, %s1053_s29  ;;  %p35_p7 = scmp.ne.s32.totalorder %s978_s17, %s974_s16 }
   0xe   : > { %p800_p6 = pnand %p799_p4, %p42_p1  ;;  %p26_p8 = scmp.eq.s32.totalorder %s25_s5, 0 }
   0xf   : > { %p36_p9 = scmp.eq.s32.totalorder %s982_s18, 0  ;;  %p41_p10 = scmp.ne.s32.totalorder %s974_s16, %s970_s15 }
  0x10   : > { %802 = dma.hbm_to_vmem [thread:$0]  (!%p800_p6), %s153_s21, 8192, %s155_s25, [#allocation7], %s985_s26, %s985_s26, %s986_s27  }
  0x11   : > { %p128_p11 = scmp.eq.s32.totalorder %s1037_s22, 1  ;;  %p1069_p12 = por %p42_p1, %p41_p10 }
  0x12   : > { %s1065_s6 = scalar_select %p26_p8, %s978_s17, %s28_s30  }
  0x13   : > { %p1073_p13 = por %p128_p11, %p35_p7  ;;  %p134_p0 = scmp.eq.s32.totalorder %s771_s28, 1 }
  0x14   : > { %p37_p2 = por %p36_p9, %p35_p7  ;;  %s174_s9 = sand.u32 1, %s978_s17  }
  0x15   : > { %p1078_p4 = por %p134_p0, %p41_p10  ;;  %p812_p6 = scmp.lt.s32.totalorder %s982_s18, 2 }
  0x16   : > { %s775_s11 = sshll.u32 %s174_s9, 3  ;;  %s789_s12 = sshll.u32 %s982_s18, 3 }
  0x17   : > { %s183_s19 = scalar_lea.hbm %s1491_s0, %s789_s12  ;;  %s178_s21 = scalar_lea.vmem [#allocation3], %s775_s11 }
  0x18   : > { %s185_s20 = sshll.u32 %s183_s19, 4  ;;  %s187_s24 = sshll.u32 %s178_s21, 4  ;;  %s186_s20 = int_to_ptr.hbm [resolvable:$true] %s185_s20  ;;  %s188_s24 = int_to_ptr.vmem [resolvable:$true] %s187_s24 }
  0x19   : > { %p1087_p8 = pnand %p812_p6, %p37_p2  ;;  %s175_s26 = scalar_lea.sflag [#allocation4], %s174_s9 }
  0x1a   : > { %s882_s27 = sshra.s32 %s186_s20, 4  ;;  %s889_s11 = scalar_lea.hbm %s1491_s0, 16  ;;  %s883_s27 = int_to_ptr.hbm [resolvable:$true] %s882_s27 }
  0x1b   : > { %s884_s28 = scalar_lea.hbm %s883_s27, 8  ;;  %p886_p9 = pneg %p1087_p8 }
  0x1c   : > { %p885_p7 = scmp.ne.s32.totalorder %s883_s27, %s884_s28  ;;  %p890_p0 = scmp.lt.s32.totalorder %s883_s27, %s1491_s0 }
  0x1d   : > { %p891_p2 = scmp.lt.s32.totalorder %s889_s11, %s884_s28 }
  0x1e   : > { %p887_p10 = pnand %p886_p9, %p885_p7 }
  0x1f   : > { %p892_p6 = por %p891_p2, %p890_p0 }
  0x20   : > { %p888_p11 = pneg %p887_p10 }
  0x22   : > { %p893_p5 = pnand %p892_p6, %p888_p11 }
  0x24   : > { %896 = shalt.err (!%p893_p5)
}
  0x25   : > { %806 = dma.hbm_to_vmem [thread:$0]  (!%p1087_p8), %s186_s20, 128, %s188_s24, %s175_s26  }
  0x26   : > { %196 = sbr.rel (%p1042_p3) target bundleno = 697 (0x2b9), region = 36 }
  0x2b   : > { %s1104_s9 = sand.u32 1, %s974_s16  }
  0x2c   : > { %s779_s14 = sshll.u32 %s1104_s9, 3  ;;  %s199_s19 = scalar_lea.sflag [#allocation4], %s1104_s9 }
  0x2d   : > { %s1110_s21 = scalar_lea.vmem [#allocation3], %s779_s14 }
  0x2e   : > { %957 = dma.done.wait (%p1069_p12), %s199_s19, 128  }
  0x2f   : > { %959 = vsyncadd (%p1069_p12), %s199_s19, 4294967168 }
  0x30   : > { %961 = dma.done.wait (%p42_p1), [#allocation7], 8192  }
  0x31   : > { %963 = vsyncadd (%p42_p1), [#allocation7], 4294959104  ;;  %v1120_v0 = vld [vmem:[#allocation6 + $0xf8] sm:$0xff]  ;;  %v1124_v2 = vld [vmem:[#allocation6 + $0xe8] sm:$0xff]  ;;  %vm397_vm0 = vcmask 1043456   ;;  %vm624_vm1 = vcmask 130048  }
  0x32   : > { %v1122_v1 = vld [vmem:[#allocation6 + $0x1f8] sm:$0xff]  ;;  %352 = vmatpush.msra.mxu2 %v1120_v0  ;;  %v1128_v3 = vld [vmem:[#allocation6 + $0x1e8] sm:$0xff]  ;;  %v1134_v6 = vld [vmem:[#allocation6 + $0xf0] sm:$0xff]  ;;  %s790_s25 = sshll.u32 %s1037_s22, 3  ;;  %s232_s30 = scalar_lea.vmem [#allocation8], %s779_s14 }
  0x33   : > { %372 = vmatpush.msra.mxu3 %v1122_v1  ;;  %v1130_v4 = vld [vmem:[#allocation6 + $0xd8] sm:$0xff]  ;;  %v1138_v7 = vld [vmem:[#allocation6 + $0xc8] sm:$0xff]  ;;  %v1140_v8 = vld [vmem:[#allocation6 + $0x1f0] sm:$0xff]  ;;  %312 = vmatpush.msra.mxu0 %v1134_v6  ;;  %s686_s28 = scalar_lea.hbm %s1495_s4, %s790_s25  ;;  %s688_s5 = sshll.u32 %s232_s30, 4  ;;  %s689_s5 = int_to_ptr.vmem [resolvable:$true] %s688_s5 }
  0x34   : > { %v1132_v5 = vld [vmem:[#allocation6 + $0x1d8] sm:$0xff]  ;;  %353 = vmatpush.msra.mxu2 %v1124_v2  ;;  %v1142_v9 = vld [vmem:[#allocation6 + $0x1c8] sm:$0xff]  ;;  %332 = vmatpush.msra.mxu1 %v1140_v8  ;;  %v1146_v10 = vld [vmem:[#allocation6 + $0xe0] sm:$0xff]  ;;  %s690_s11 = sshll.u32 %s686_s28, 4  ;;  %s675_s22 = scalar_lea.sflag [#allocation5], %s1104_s9  ;;  %s691_s11 = int_to_ptr.hbm [resolvable:$true] %s690_s11 }
  0x35   : > { %373 = vmatpush.msra.mxu3 %v1128_v3  ;;  %v1148_v11 = vld [vmem:[#allocation6 + $0x1e0] sm:$0xff]  ;;  %v1152_v12 = vld [vmem:[#allocation6 + $0xd0] sm:$0xff]  ;;  %v1156_v14 = vld [vmem:[#allocation6 + $0xb8] sm:$0xff]  ;;  %313 = vmatpush.msra.mxu0 %v1146_v10  ;;  %s926_s12 = sshra.s32 %s691_s11, 4  ;;  %s932_s14 = scalar_lea.hbm %s1495_s4, 16  ;;  %s927_s12 = int_to_ptr.hbm [resolvable:$true] %s926_s12 }
  0x36   : > { %354 = vmatpush.msra.mxu2 %v1130_v4  ;;  %v1154_v13 = vld [vmem:[#allocation6 + $0x1d0] sm:$0xff]  ;;  %v1158_v15 = vld [vmem:[#allocation6 + $0x1b8] sm:$0xff]  ;;  %333 = vmatpush.msra.mxu1 %v1148_v11  ;;  %v1164_v16 = vld [vmem:[#allocation6 + $0xc0] sm:$0xff]  ;;  %s928_s13 = scalar_lea.hbm %s927_s12, 8  ;;  %p933_p12 = scmp.lt.s32.totalorder %s927_s12, %s1495_s4 }
  0x37   : > { %374 = vmatpush.msra.mxu3 %v1132_v5  ;;  %v1166_v17 = vld [vmem:[#allocation6 + $0x1c0] sm:$0xff]  ;;  %v1168_v18 = vld [vmem:[#allocation6 + $0xa8] sm:$0xff]  ;;  %314 = vmatpush.msra.mxu0 %v1152_v12  ;;  %v1176_v20 = vld [vmem:[#allocation6 + $0xb0] sm:$0xff]  ;;  %p929_p1 = scmp.ne.s32.totalorder %s927_s12, %s928_s13  ;;  %p934_p8 = scmp.lt.s32.totalorder %s932_s14, %s928_s13 }
  0x38   : > { %355 = vmatpush.msra.mxu2 %v1138_v7  ;;  %v1170_v19 = vld [vmem:[#allocation6 + $0x1a8] sm:$0xff]  ;;  %334 = vmatpush.msra.mxu1 %v1154_v13  ;;  %v1178_v21 = vld [vmem:[#allocation6 + $0x1b0] sm:$0xff]  ;;  %v1180_v22 = vld [vmem:[#allocation6 + $0x98] sm:$0xff] }
  0x39   : > { %375 = vmatpush.msra.mxu3 %v1142_v9  ;;  %v1182_v23 = vld [vmem:[#allocation6 + $0x198] sm:$0xff]  ;;  %315 = vmatpush.msra.mxu0 %v1164_v16  ;;  %v1188_v24 = vld [vmem:[#allocation6 + $0xa0] sm:$0xff]  ;;  %v1192_v26 = vld [vmem:[#allocation6 + $0x88] sm:$0xff]  ;;  %p930_p3 = pnand %p929_p1, %p1073_p13  ;;  %p935_p7 = por %p934_p8, %p933_p12 }
  0x3a   : > { %356 = vmatpush.msra.mxu2 %v1156_v14  ;;  %335 = vmatpush.msra.mxu1 %v1166_v17  ;;  %v1190_v25 = vld [vmem:[#allocation6 + $0x1a0] sm:$0xff]  ;;  %v1194_v27 = vld [vmem:[#allocation6 + $0x188] sm:$0xff]  ;;  %v1200_v28 = vld [vmem:[#allocation6 + $0x90] sm:$0xff] }
  0x3b   : > { %376 = vmatpush.msra.mxu3 %v1158_v15  ;;  %316 = vmatpush.msra.mxu0 %v1176_v20  ;;  %v1202_v29 = vld [vmem:[#allocation6 + $0x190] sm:$0xff]  ;;  %v1204_v30 = vld [vmem:[#allocation6 + $0x78] sm:$0xff]  ;;  %v1212_v32 = vld [vmem:[#allocation6 + $0x80] sm:$0xff]  ;;  %p931_p5 = pneg %p930_p3 }
  0x3c   : > { %357 = vmatpush.msra.mxu2 %v1168_v18  ;;  %336 = vmatpush.msra.mxu1 %v1178_v21  ;;  %v1206_v31 = vld [vmem:[#allocation6 + $0x178] sm:$0xff]  ;;  %v1214_v33 = vld [vmem:[#allocation6 + $0x180] sm:$0xff]  ;;  %v1216_v34 = vld [vmem:[#allocation6 + $0x68] sm:$0xff] }
  0x3d   : > { %377 = vmatpush.msra.mxu3 %v1170_v19  ;;  %317 = vmatpush.msra.mxu0 %v1188_v24  ;;  %v1218_v35 = vld [vmem:[#allocation6 + $0x168] sm:$0xff]  ;;  %v1224_v36 = vld [vmem:[#allocation6 + $0x70] sm:$0xff]  ;;  %v1228_v38 = vld [vmem:[#allocation6 + $0x58] sm:$0xff]  ;;  %p936_p9 = pnand %p935_p7, %p931_p5 }
  0x3e   : > { %358 = vmatpush.msra.mxu2 %v1180_v22  ;;  %337 = vmatpush.msra.mxu1 %v1190_v25  ;;  %v1226_v37 = vld [vmem:[#allocation6 + $0x170] sm:$0xff]  ;;  %v1230_v39 = vld [vmem:[#allocation6 + $0x158] sm:$0xff]  ;;  %v1239_v41 = vld [vmem:[#allocation6 + $0x60] sm:$0xff] }
  0x3f   : > { %378 = vmatpush.msra.mxu3 %v1182_v23  ;;  %318 = vmatpush.msra.mxu0 %v1200_v28  ;;  %v1235_v40 = vld [vmem:[%s1110_s21] sm:$0xff]  ;;  %v1241_v42 = vld [vmem:[#allocation6 + $0x160] sm:$0xff]  ;;  %v1244_v43 = vld [vmem:[#allocation6 + $0x48] sm:$0xff] }
  0x40   : > { %359 = vmatpush.msra.mxu2 %v1192_v26  ;;  %338 = vmatpush.msra.mxu1 %v1202_v29  ;;  %1506 = vst [vmem:[#allocation12_spill] sm:$0xff] %v1235_v40  ;;  %v1246_v44 = vld [vmem:[#allocation6 + $0x148] sm:$0xff]  ;;  %v1252_v45 = vld [vmem:[#allocation6 + $0x50] sm:$0xff]  ;;  %v1256_v47 = vld [vmem:[#allocation6 + $0x38] sm:$0xff] }
  0x41   : > { %379 = vmatpush.msra.mxu3 %v1194_v27  ;;  %319 = vmatpush.msra.mxu0 %v1212_v32  ;;  %299 = vst [vmem:[#allocation1] ss:$2 sm:$0xff] %v1235_v40  ;;  %v1254_v46 = vld [vmem:[#allocation6 + $0x150] sm:$0xff]  ;;  %v1258_v48 = vld [vmem:[#allocation6 + $0x138] sm:$0xff]  ;;  %v1264_v49 = vld [vmem:[#allocation6 + $0x40] sm:$0xff] }
  0x42   : > { %360 = vmatpush.msra.mxu2 %v1204_v30  ;;  %339 = vmatpush.msra.mxu1 %v1214_v33  ;;  %v1266_v50 = vld [vmem:[#allocation6 + $0x140] sm:$0xff]  ;;  %v1268_v51 = vld [vmem:[#allocation6 + $0x28] sm:$0xff]  ;;  %v1274_v53 = vld [vmem:[#allocation6 + $0x18] sm:$0xff] }
  0x43   : > { %380 = vmatpush.msra.mxu3 %v1206_v31  ;;  %320 = vmatpush.msra.mxu0 %v1224_v36  ;;  %v1270_v52 = vld [vmem:[#allocation6 + $0x128] sm:$0xff]  ;;  %v1278_v54 = vld [vmem:[#allocation6 + $0x118] sm:$0xff]  ;;  %v1280_v55 = vld [vmem:[#allocation6 + $0x30] sm:$0xff] }
  0x44   : > { %361 = vmatpush.msra.mxu2 %v1216_v34  ;;  %340 = vmatpush.msra.mxu1 %v1226_v37  ;;  %1507 = vst [vmem:[#allocation13_spill] sm:$0xff] %v1270_v52  ;;  %v1282_v56 = vld [vmem:[#allocation6 + $0x130] sm:$0xff]  ;;  %v1289_v59 = vld [vmem:[#allocation6 + $0x20] sm:$0xff]  ;;  %v1293_v61 = vld [vmem:[#allocation6 + $0x8] sm:$0xff] }
  0x45   : > { %381 = vmatpush.msra.mxu3 %v1218_v35  ;;  %321 = vmatpush.msra.mxu0 %v1239_v41  ;;  %1508 = vst [vmem:[#allocation14_spill] sm:$0xff] %v1278_v54  ;;  %v1291_v60 = vld [vmem:[#allocation6 + $0x120] sm:$0xff]  ;;  %v1295_v62 = vld [vmem:[#allocation6 + $0x108] sm:$0xff]  ;;  %v1301_v63 = vld [vmem:[#allocation6 + $0x10] sm:$0xff] }
  0x46   : > { %362 = vmatpush.msra.mxu2 %v1228_v38  ;;  %341 = vmatpush.msra.mxu1 %v1241_v42 }
  0x47   : > { %382 = vmatpush.msra.mxu3 %v1230_v39  ;;  %322 = vmatpush.msra.mxu0 %v1252_v45 }
  0x48   : > { %363 = vmatpush.msra.mxu2 %v1244_v43  ;;  %342 = vmatpush.msra.mxu1 %v1254_v46  ;;  %v300_v57 = vld.sshfl [vmem:[#allocation1] sm:$0xff pattern:$0x75316420]  ;;  %v301_v58 = vld.sshfl [vmem:[#allocation1 + $0x8] sm:$0xff pattern:$0x75316420] }
  0x49   : > { %383 = vmatpush.msra.mxu3 %v1246_v44  ;;  %323 = vmatpush.msra.mxu0 %v1264_v49  ;;  %307 = vst [vmem:[#allocation1] ss:$2 sm:$0xff] %v1235_v40  ;;  %v1303_v40 = vld [vmem:[#allocation6 + $0x110] sm:$0xff] }
  0x4a   : > { %364 = vmatpush.msra.mxu2 %v1256_v47  ;;  %343 = vmatpush.msra.mxu1 %v1266_v50  ;;  %304 = vst [vmem:[#allocation2 + $0x10] sm:$0xf] %v300_v57  ;;  %v1309_v57 = vld [vmem:[#allocation6] sm:$0xff] }
  0x4b   : > { %384 = vmatpush.msra.mxu3 %v1258_v48  ;;  %324 = vmatpush.msra.mxu0 %v1280_v55  ;;  %305 = vst [vmem:[#allocation2] sm:$0xf] %v301_v58 }
  0x4c   : > { %365 = vmatpush.msra.mxu2 %v1268_v51  ;;  %344 = vmatpush.msra.mxu1 %v1282_v56 }
  0x4d   : > { %385 = vmatpush.msra.mxu3 %v1270_v52  ;;  %325 = vmatpush.msra.mxu0 %v1289_v59  ;;  %v1311_v52 = vld [vmem:[#allocation6 + $0x100] sm:$0xff] }
  0x4e   : > { %366 = vmatpush.msra.mxu2 %v1274_v53  ;;  %345 = vmatpush.msra.mxu1 %v1291_v60 }
  0x4f   : > { %386 = vmatpush.msra.mxu3 %v1278_v54  ;;  %326 = vmatpush.msra.mxu0 %v1301_v63 }
  0x50   : > { %367 = vmatpush.msra.mxu2 %v1293_v61  ;;  %346 = vmatpush.msra.mxu1 %v1303_v40  ;;  %v308_v58 = vld.sshfl [vmem:[#allocation1] sm:$0xff pattern:$0x75316420]  ;;  %v309_v54 = vld.sshfl [vmem:[#allocation1 + $0x8] sm:$0xff pattern:$0x75316420] }
  0x51   : > { %387 = vmatpush.msra.mxu3 %v1295_v62  ;;  %327 = vmatpush.msra.mxu0 %v1309_v57 }
  0x52   : > { %455 = vmatpush.msrb.mxu2 %v1120_v0  ;;  %347 = vmatpush.msra.mxu1 %v1311_v52 }
  0x53   : > { %475 = vmatpush.msrb.mxu3 %v1122_v1  ;;  %368 = vmatmul.f32.vlgmr.msra.gmra.mxu2 %v308_v58 }
  0x54   : > { %388 = vmatmul.f32.vlgmr.msra.gmra.mxu3 %v309_v54  ;;  %328 = vmatmul.f32.vlgmr.msra.gmra.mxu0 %v308_v58  ;;  %v1510_v58 = vld [vmem:[#allocation14_spill] sm:$0xff] }
  0x55   : > { %348 = vmatmul.f32.vlgmr.msra.gmra.mxu1 %v309_v54  ;;  %415 = vmatpush.msrb.mxu0 %v1134_v6  ;;  %v1509_v54 = vld [vmem:[#allocation13_spill] sm:$0xff] }
  0x56   : > { %435 = vmatpush.msrb.mxu1 %v1140_v8  ;;  %456 = vmatpush.msrb.mxu2 %v1124_v2 }
  0x57   : > { %476 = vmatpush.msrb.mxu3 %v1128_v3  ;;  %416 = vmatpush.msrb.mxu0 %v1146_v10 }
  0x58   : > { %436 = vmatpush.msrb.mxu1 %v1148_v11  ;;  %457 = vmatpush.msrb.mxu2 %v1130_v4 }
  0x59   : > { %477 = vmatpush.msrb.mxu3 %v1132_v5  ;;  %417 = vmatpush.msrb.mxu0 %v1152_v12 }
  0x5a   : > { %437 = vmatpush.msrb.mxu1 %v1154_v13  ;;  %458 = vmatpush.msrb.mxu2 %v1138_v7 }
  0x5b   : > { %478 = vmatpush.msrb.mxu3 %v1142_v9  ;;  %418 = vmatpush.msrb.mxu0 %v1164_v16 }
  0x5c   : > { %438 = vmatpush.msrb.mxu1 %v1166_v17  ;;  %459 = vmatpush.msrb.mxu2 %v1156_v14 }
  0x5d   : > { %479 = vmatpush.msrb.mxu3 %v1158_v15  ;;  %419 = vmatpush.msrb.mxu0 %v1176_v20 }
  0x5e   : > { %439 = vmatpush.msrb.mxu1 %v1178_v21  ;;  %460 = vmatpush.msrb.mxu2 %v1168_v18 }
  0x5f   : > { %480 = vmatpush.msrb.mxu3 %v1170_v19  ;;  %420 = vmatpush.msrb.mxu0 %v1188_v24 }
  0x60   : > { %440 = vmatpush.msrb.mxu1 %v1190_v25  ;;  %461 = vmatpush.msrb.mxu2 %v1180_v22 }
  0x61   : > { %481 = vmatpush.msrb.mxu3 %v1182_v23  ;;  %421 = vmatpush.msrb.mxu0 %v1200_v28 }
  0x62   : > { %441 = vmatpush.msrb.mxu1 %v1202_v29  ;;  %462 = vmatpush.msrb.mxu2 %v1192_v26 }
  0x63   : > { %482 = vmatpush.msrb.mxu3 %v1194_v27  ;;  %422 = vmatpush.msrb.mxu0 %v1212_v32 }
  0x64   : > { %442 = vmatpush.msrb.mxu1 %v1214_v33  ;;  %463 = vmatpush.msrb.mxu2 %v1204_v30 }
  0x65   : > { %483 = vmatpush.msrb.mxu3 %v1206_v31  ;;  %423 = vmatpush.msrb.mxu0 %v1224_v36 }
  0x66   : > { %443 = vmatpush.msrb.mxu1 %v1226_v37  ;;  %464 = vmatpush.msrb.mxu2 %v1216_v34 }
  0x67   : > { %484 = vmatpush.msrb.mxu3 %v1218_v35  ;;  %424 = vmatpush.msrb.mxu0 %v1239_v41 }
  0x68   : > { %444 = vmatpush.msrb.mxu1 %v1241_v42  ;;  %465 = vmatpush.msrb.mxu2 %v1228_v38 }
  0x69   : > { %485 = vmatpush.msrb.mxu3 %v1230_v39  ;;  %425 = vmatpush.msrb.mxu0 %v1252_v45 }
  0x6a   : > { %445 = vmatpush.msrb.mxu1 %v1254_v46  ;;  %466 = vmatpush.msrb.mxu2 %v1244_v43 }
  0x6b   : > { %486 = vmatpush.msrb.mxu3 %v1246_v44  ;;  %426 = vmatpush.msrb.mxu0 %v1264_v49 }
  0x6c   : > { %446 = vmatpush.msrb.mxu1 %v1266_v50  ;;  %467 = vmatpush.msrb.mxu2 %v1256_v47 }
  0x6d   : > { %487 = vmatpush.msrb.mxu3 %v1258_v48  ;;  %427 = vmatpush.msrb.mxu0 %v1280_v55 }
  0x6e   : > { %447 = vmatpush.msrb.mxu1 %v1282_v56  ;;  %468 = vmatpush.msrb.mxu2 %v1268_v51 }
  0x6f   : > { %488 = vmatpush.msrb.mxu3 %v1509_v54  ;;  %428 = vmatpush.msrb.mxu0 %v1289_v59 }
  0x70   : > { %448 = vmatpush.msrb.mxu1 %v1291_v60  ;;  %469 = vmatpush.msrb.mxu2 %v1274_v53 }
  0x71   : > { %489 = vmatpush.msrb.mxu3 %v1510_v58  ;;  %429 = vmatpush.msrb.mxu0 %v1301_v63 }
  0x72   : > { %449 = vmatpush.msrb.mxu1 %v1303_v40  ;;  %470 = vmatpush.msrb.mxu2 %v1293_v61 }
  0x73   : > { %490 = vmatpush.msrb.mxu3 %v1295_v62  ;;  %430 = vmatpush.msrb.mxu0 %v1309_v57 }
  0x74   : > { %450 = vmatpush.msrb.mxu1 %v1311_v52  ;;  %556 = vmatpush.msra.mxu2 %v1120_v0 }
  0x75   : > { %516 = vmatpush.msra.mxu0 %v1134_v6  ;;  %576 = vmatpush.msra.mxu3 %v1122_v1 }
  0x76   : > { %536 = vmatpush.msra.mxu1 %v1140_v8  ;;  %557 = vmatpush.msra.mxu2 %v1124_v2  ;;  %v1511_v8 = vld [vmem:[#allocation12_spill] sm:$0xff] }
  0x77   : > { %517 = vmatpush.msra.mxu0 %v1146_v10  ;;  %577 = vmatpush.msra.mxu3 %v1128_v3 }
  0x78   : > { %537 = vmatpush.msra.mxu1 %v1148_v11  ;;  %558 = vmatpush.msra.mxu2 %v1130_v4 }
  0x79   : > { %518 = vmatpush.msra.mxu0 %v1152_v12  ;;  %578 = vmatpush.msra.mxu3 %v1132_v5 }
  0x7a   : > { %538 = vmatpush.msra.mxu1 %v1154_v13  ;;  %559 = vmatpush.msra.mxu2 %v1138_v7 }
  0x7b   : > { %519 = vmatpush.msra.mxu0 %v1164_v16  ;;  %579 = vmatpush.msra.mxu3 %v1142_v9  ;;  %v306_v9 = vmul.f32 0.05, %v1511_v8 }
  0x7c   : > { %539 = vmatpush.msra.mxu1 %v1166_v17  ;;  %560 = vmatpush.msra.mxu2 %v1156_v14 }
  0x7d   : > { %520 = vmatpush.msra.mxu0 %v1176_v20  ;;  %580 = vmatpush.msra.mxu3 %v1158_v15 }
  0x7e   : > { %540 = vmatpush.msra.mxu1 %v1178_v21  ;;  %561 = vmatpush.msra.mxu2 %v1168_v18 }
  0x7f   : > { %521 = vmatpush.msra.mxu0 %v1188_v24  ;;  %581 = vmatpush.msra.mxu3 %v1170_v19 }
  0x80   : > { %541 = vmatpush.msra.mxu1 %v1190_v25  ;;  %562 = vmatpush.msra.mxu2 %v1180_v22 }
  0x81   : > { %522 = vmatpush.msra.mxu0 %v1200_v28  ;;  %582 = vmatpush.msra.mxu3 %v1182_v23 }
  0x82   : > { %542 = vmatpush.msra.mxu1 %v1202_v29  ;;  %563 = vmatpush.msra.mxu2 %v1192_v26 }
  0x83   : > { %523 = vmatpush.msra.mxu0 %v1212_v32  ;;  %583 = vmatpush.msra.mxu3 %v1194_v27 }
  0x84   : > { %543 = vmatpush.msra.mxu1 %v1214_v33  ;;  %564 = vmatpush.msra.mxu2 %v1204_v30 }
  0x85   : > { %524 = vmatpush.msra.mxu0 %v1224_v36  ;;  %584 = vmatpush.msra.mxu3 %v1206_v31 }
  0x86   : > { %544 = vmatpush.msra.mxu1 %v1226_v37  ;;  %565 = vmatpush.msra.mxu2 %v1216_v34  ;;  %v618_v34 = vld [vmem:[%s1494_s3] sm:$0xf] }
  0x87   : > { %525 = vmatpush.msra.mxu0 %v1239_v41  ;;  %585 = vmatpush.msra.mxu3 %v1218_v35  ;;  %v987_v35 = vmov 0  }
  0x88   : > { %545 = vmatpush.msra.mxu1 %v1241_v42  ;;  %566 = vmatpush.msra.mxu2 %v1228_v38 }
  0x89   : > { %526 = vmatpush.msra.mxu0 %v1252_v45  ;;  %586 = vmatpush.msra.mxu3 %v1230_v39 }
  0x8a   : > { %546 = vmatpush.msra.mxu1 %v1254_v46  ;;  %567 = vmatpush.msra.mxu2 %v1244_v43 }
  0x8b   : > { %527 = vmatpush.msra.mxu0 %v1264_v49  ;;  %587 = vmatpush.msra.mxu3 %v1246_v44  ;;  %v613_v49 = vld [vmem:[%s1493_s2] sm:$0xf] }
  0x8c   : > { %547 = vmatpush.msra.mxu1 %v1266_v50  ;;  %568 = vmatpush.msra.mxu2 %v1256_v47 }
  0x8d   : > { %528 = vmatpush.msra.mxu0 %v1280_v55  ;;  %588 = vmatpush.msra.mxu3 %v1258_v48 }
  0x8e   : > { %548 = vmatpush.msra.mxu1 %v1282_v56  ;;  %569 = vmatpush.msra.mxu2 %v1268_v51 }
  0x8f   : > { %529 = vmatpush.msra.mxu0 %v1289_v59  ;;  %589 = vmatpush.msra.mxu3 %v1509_v54 }
  0x90   : > { %549 = vmatpush.msra.mxu1 %v1291_v60  ;;  %570 = vmatpush.msra.mxu2 %v1274_v53 }
  0x91   : > { %530 = vmatpush.msra.mxu0 %v1301_v63  ;;  %590 = vmatpush.msra.mxu3 %v1510_v58 }
  0x92   : > { %550 = vmatpush.msra.mxu1 %v1303_v40  ;;  %571 = vmatpush.msra.mxu2 %v1293_v61 }
  0x93   : > { %531 = vmatpush.msra.mxu0 %v1309_v57  ;;  %591 = vmatpush.msra.mxu3 %v1295_v62 }
  0x94   : > { %551 = vmatpush.msra.mxu1 %v1311_v52  ;;  %851 = vset.pattern.permute.xlu0 %v987_v35 }
  0x95   : > { %621 = vperm.xlu0 %851, %v618_v34  }
  0xd1   : > { %v329_v0 = vpop.f32.mrf.mxu0 }
  0xd2   : > { %v349_v1 = vpop.f32.mrf.mxu1 }
  0xd3   : > { %v350_v2 = vadd.f32 %v349_v1, %v329_v0 }
  0xd5   : > { %v392_v7 = vmul.f32 0.95, %v350_v2 }
  0xd6   : > { %v369_v3 = vpop.f32.mrf.mxu2 }
  0xd7   : > { %v389_v4 = vpop.f32.mrf.mxu3 }
  0xd8   : > { %v390_v5 = vadd.f32 %v389_v4, %v369_v3 }
  0xda   : > { %v393_v6 = vmul.f32 0.95, %v390_v5 }
  0xdc   : > { %v396_v10 = vrot.slane %v393_v6, 4 }
  0xde   : > { %v398_v11 = vsel %vm397_vm0, %v392_v7, %v396_v10 }
  0xdf   : > { %v400_v12 = vadd.f32 %v398_v11, %v306_v9 }
  0xe1   : > { %403 = vst [vmem:[#allocation1 + $0x1] ss:$2 sm:$0xff] %v400_v12 }
  0xe8   : > { %v404_v13 = vld.sshfl [vmem:[#allocation1] sm:$0xff pattern:$0x75316420]  ;;  %v405_v14 = vld.sshfl [vmem:[#allocation1 + $0x8] sm:$0xff pattern:$0x75316420] }
  0xe9   : > { %408 = vst [vmem:[#allocation2 + $0x10] sm:$0xf0] %v404_v13 }
  0xea   : > { %409 = vst [vmem:[#allocation2] sm:$0xf0] %v405_v14 }
  0xeb   : > { %410 = vst [vmem:[#allocation1] ss:$2 sm:$0xff] %v400_v12 }
  0xf0   : > { %v614_v50 = vld [vmem:[#allocation2 + $0x10] sm:$0xff] }
  0xf1   : > { %v615_v51 = vld [vmem:[#allocation2] sm:$0xff] }
  0xf2   : > { %v411_v15 = vld.sshfl [vmem:[#allocation1] sm:$0xff pattern:$0x75316420]  ;;  %v412_v16 = vld.sshfl [vmem:[#allocation1 + $0x8] sm:$0xff pattern:$0x75316420] }
  0xf3   : > { %431 = vmatmul.f32.vlgmr.msrb.gmra.mxu0 %v411_v15  ;;  %451 = vmatmul.f32.vlgmr.msrb.gmra.mxu1 %v412_v16 }
  0xf4   : > { %471 = vmatmul.f32.vlgmr.msrb.gmra.mxu2 %v411_v15  ;;  %491 = vmatmul.f32.vlgmr.msrb.gmra.mxu3 %v412_v16 }
 0x107   : > { %v622_v52 = vpop.permute.xlu0 %621 }
 0x170   : > { %v432_v17 = vpop.f32.mrf.mxu0  ;;  %v452_v18 = vpop.f32.mrf.mxu1 }
 0x171   : > { %v453_v21 = vadd.f32 %v452_v18, %v432_v17 }
 0x173   : > { %v495_v24 = vmul.f32 0.95, %v453_v21 }
 0x177   : > { %v472_v19 = vpop.f32.mrf.mxu2  ;;  %v492_v20 = vpop.f32.mrf.mxu3 }
 0x178   : > { %v493_v22 = vadd.f32 %v492_v20, %v472_v19 }
 0x17a   : > { %v496_v23 = vmul.f32 0.95, %v493_v22 }
 0x17c   : > { %v499_v25 = vrot.slane %v496_v23, 4 }
 0x17e   : > { %v500_v26 = vsel %vm397_vm0, %v495_v24, %v499_v25 }
 0x17f   : > { %v502_v27 = vadd.f32 %v500_v26, %v306_v9 }
 0x181   : > { %504 = vst [vmem:[#allocation1] ss:$2 sm:$0xff] %v502_v27 }
 0x188   : > { %v505_v28 = vld.sshfl [vmem:[#allocation1] sm:$0xff pattern:$0x75316420]  ;;  %v506_v29 = vld.sshfl [vmem:[#allocation1 + $0x8] sm:$0xff pattern:$0x75316420] }
 0x189   : > { %511 = vst [vmem:[#allocation1] ss:$2 sm:$0xff] %v502_v27 }
 0x18a   : > { %509 = vst [vmem:[#allocation2 + $0x18] sm:$0xf] %v505_v28 }
 0x18b   : > { %510 = vst [vmem:[#allocation2 + $0x8] sm:$0xf] %v506_v29 }
 0x190   : > { %v512_v30 = vld.sshfl [vmem:[#allocation1] sm:$0xff pattern:$0x75316420]  ;;  %v513_v31 = vld.sshfl [vmem:[#allocation1 + $0x8] sm:$0xff pattern:$0x75316420] }
 0x191   : > { %532 = vmatmul.f32.vlgmr.msra.gmra.mxu0 %v512_v30  ;;  %552 = vmatmul.f32.vlgmr.msra.gmra.mxu1 %v513_v31 }
 0x192   : > { %572 = vmatmul.f32.vlgmr.msra.gmra.mxu2 %v512_v30  ;;  %592 = vmatmul.f32.vlgmr.msra.gmra.mxu3 %v513_v31 }
 0x20e   : > { %v533_v32 = vpop.f32.mrf.mxu0  ;;  %v553_v33 = vpop.f32.mrf.mxu1 }
 0x20f   : > { %v554_v38 = vadd.f32 %v553_v33, %v533_v32 }
 0x211   : > { %v596_v41 = vmul.f32 0.95, %v554_v38 }
 0x215   : > { %v573_v36 = vpop.f32.mrf.mxu2  ;;  %v593_v37 = vpop.f32.mrf.mxu3 }
 0x216   : > { %v594_v39 = vadd.f32 %v593_v37, %v573_v36 }
 0x218   : > { %v597_v40 = vmul.f32 0.95, %v594_v39 }
 0x21a   : > { %v600_v42 = vrot.slane %v597_v40, 4 }
 0x21c   : > { %v601_v43 = vsel %vm397_vm0, %v596_v41, %v600_v42 }
 0x21d   : > { %v603_v44 = vadd.f32 %v601_v43, %v306_v9 }
 0x21f   : > { %606 = vst [vmem:[#allocation1 + $0x1] ss:$2 sm:$0xff] %v603_v44 }
 0x226   : > { %v607_v45 = vld.sshfl [vmem:[#allocation1] sm:$0xff pattern:$0x75316420]  ;;  %v608_v46 = vld.sshfl [vmem:[#allocation1 + $0x8] sm:$0xff pattern:$0x75316420] }
 0x227   : > { %611 = vst [vmem:[#allocation2 + $0x18] sm:$0xf0] %v607_v45 }
 0x228   : > { %612 = vst [vmem:[#allocation2 + $0x8] sm:$0xf0] %v608_v46 }
 0x22e   : > { %v616_v47 = vld [vmem:[#allocation2 + $0x18] sm:$0xff] }
 0x22f   : > { %642 = vmatpush.msrb.mxu0 %v616_v47  ;;  %v617_v48 = vld [vmem:[#allocation2 + $0x8] sm:$0xff] }
 0x230   : > { %662 = vmatpush.msrb.mxu1 %v617_v48 }
 0x231   : > { %643 = vmatpush.msrb.mxu0 %v614_v50 }
 0x232   : > { %663 = vmatpush.msrb.mxu1 %v615_v51  ;;  %782 = vmatmul.msk.f32.vlgmr.msrb.gmra.mxu0 %vm624_vm1, %v613_v49 }
 0x233   : > { %783 = vmatmul.msk.f32.vlgmr.msrb.gmra.mxu1 %vm624_vm1, %v613_v49 }
 0x2af   : > { %v645_v55 = vpop.f32.mrf.mxu0 }
 0x2b0   : > { %v665_v53 = vpop.f32.mrf.mxu1  ;;  %v646_v60 = vadd.f32 %v645_v55, %v622_v52 }
 0x2b1   : > { %v666_v56 = vadd.f32 %v665_v53, %v622_v52 }
 0x2b3   : > { %v670_v59 = vrot.slane %v666_v56, 4 }
 0x2b5   : > { %v671_v61 = vsel %vm397_vm0, %v646_v60, %v670_v59 }
 0x2b6   : > { %673 = vst [vmem:[%s232_s30] sm:$0xff] %v671_v61 }
 0x2b7   : > { %939 = shalt.err (!%p936_p9)
}
 0x2b8   : > { %797 = dma.vmem_to_hbm [thread:$0]  (%p1073_p13), %s689_s5, 128, %s691_s11, %s675_s22  }
 0x2b9 PF: > { %s702_s9 = sand.u32 1, %s970_s15   ;;  %p1512_p10 = scmp.ge.s32.totalorder %s982_s18, 2 }
 0x2ba   : > { %s703_s20 = scalar_lea.sflag [#allocation5], %s702_s9 }
 0x2bb   : > { %p808_p11 = pnand %p1512_p10, %p1078_p4 }
 0x2bd   : > { %p809_p0 = pneg %p808_p11 }
 0x2bf   : > { %965 = dma.done.wait (%p809_p0), %s703_s20, 128  }
 0x2c0   : > { %967 = vsyncadd (%p809_p0), %s703_s20, 4294967168  ;;  %p18_p2 = scmp.ge.s32.totalorder %s1053_s29, 4   ;;  %s1513_s15 = smov %s974_s16 }
 0x2c1   : > { %s1514_s16 = smov %s978_s17  ;;  %s1515_s17 = smov %s1065_s6 }
 0x2c2   : > { %s1516_s18 = smov %s1053_s29  ;;  %20 = sbr.rel (!%p18_p2) target bundleno = 6 (0x6), region = 87 }
 0x2c7   :  { %709 = vsyncpa [#allocation4], 1 }
 0x2c8   :  { %711 = vsyncpa [#allocation4 + $0x1], 1 }
 0x2c9   :  { %712 = vsyncpa [#allocation7], 1 }
 0x2ca   :  { %713 = vsyncpa [#allocation5], 1 }
 0x2cb   :  { %715 = vsyncpa [#allocation5 + $0x1], 1 }

</bundles_post_ra>
